<compile_context>
chip_gen: v7x
topology: tpu7x:2x2x1
jax: 0.10.0
libtpu: 0.0.40
codegen_flags: <defaults>
</compile_context>

<pallas_src>
import math

import numpy as np
import jax
import jax.numpy as jnp
from jax import lax
from jax.experimental import pallas as pl
from jax.experimental.pallas import tpu as pltpu

# ----------------------------- model config (small) ------------------------------
D_MODEL = 32
HEADS = 4
D_FF = 64
N_LAYERS = 2
SRC_VOCAB = 11
TRG_VOCAB = 13
MAX_SEQ_LEN = 16
SRC_PAD = 0
TRG_PAD = 0
B, S, T = 2, 8, 8
LN_EPS = 1e-5

DK = D_MODEL // HEADS          # 8   head width
TPH = (S * DK) // D_MODEL      # 2   tokens covered by one head in torch's buggy reshape
GRP = D_MODEL // DK            # 4   dk-wide feature groups per token
M = B * S                      # 16  token rows (batch * seq)
V_PAD = 128                    # lane-dense padded vocab width for the classifier output

assert S == T and D_MODEL % HEADS == 0 and GRP * TPH == S


# --------------------- constant matrices for the attention value path -------------
def build_value_path_constants(nb):
    """0/1 matrices realizing the *value path* of the reference attention for a slab of
    `nb` batches (nb*S rows), i.e. the exact result of

        v   = (X @ Wqkv).reshape(nb, H, -1, dk)        # torch's head reshape
        out[b,h,q,d] = sum_v v[b,h,v,d]                # einsum with softmax row-sum == 1
        out.transpose(1,2).reshape(nb, S, H*dk)

    expressed with MXU-friendly matmuls as   asmC @ ((pairC @ kv2 @ gr) * maskC)
    with kv2 = X @ Wqkv.  The head axis (nZ) is zero-padded to a multiple of 8 rows;
    the padded rows/columns contribute exactly 0.
    """
    nR, nZ = nb * S, nb * HEADS
    nZp = -(-nZ // 8) * 8                              # sublane-aligned head axis

    pairC = np.zeros((nZp, nR), np.float32)            # sum kv2 over tokens of head (b,h)
    for z in range(nZ):
        bb, h = z // HEADS, z % HEADS
        for a in range(TPH):
            pairC[z, bb * S + h * TPH + a] = 1.0
    gr = np.zeros((D_MODEL, D_MODEL), np.float32)      # sum feature groups, replicate per dk slot
    for f in range(D_MODEL):
        for c in range(D_MODEL):
            if f % DK == c % DK:
                gr[f, c] = 1.0
    asmC = np.zeros((nR, nZp), np.float32)             # broadcast a batch's head sums to its S rows
    for m in range(nR):
        for z in range(nZ):
            if z // HEADS == m // S:
                asmC[m, z] = 1.0
    maskC = np.zeros((nZp, D_MODEL), np.float32)       # head h owns output columns h*dk..(h+1)*dk-1
    for z in range(nZ):
        for c in range(D_MODEL):
            if z % HEADS == c // DK:
                maskC[z, c] = 1.0

    # numpy self-check against the literal torch reshape/einsum semantics (row-sum == 1)
    rng = np.random.RandomState(0)
    kv2 = rng.standard_normal((nR, D_MODEL)).astype(np.float32)
    v = kv2.reshape(nb, HEADS, S, DK)                  # == reshape(nb,S,D).reshape(nb,H,-1,dk)
    want = np.broadcast_to(v.sum(axis=2).reshape(nb, 1, D_MODEL),
                           (nb, S, D_MODEL)).reshape(nR, D_MODEL)
    got = asmC @ ((pairC @ kv2 @ gr) * maskC)
    assert np.allclose(got, want, rtol=1e-5, atol=1e-5)
    return pairC, asmC, maskC, gr


# ----------------------------- the single fused Pallas kernel ---------------------
def _transformer_kernel(xe_ref, pair_ref, asm_ref, maskc_ref, gr_ref, *rest):
    param_refs, o_ref = rest[:-1], rest[-1]

    def dot(a, b):
        return jnp.dot(a, b, preferred_element_type=jnp.float32)

    pairC, asmC, maskC, gr = pair_ref[...], asm_ref[...], maskc_ref[...], gr_ref[...]

    def layer_norm(x, gamma, beta):
        mu = jnp.mean(x, axis=-1, keepdims=True)
        xc = x - mu
        var = jnp.mean(xc * xc, axis=-1, keepdims=True)
        return xc * lax.rsqrt(var + LN_EPS) * gamma + beta

    def mha_value(xkv, w_qkv, w_out):
        # Factorized reference attention: out = rowsum(softmax) * head_value_sum.
        # rowsum(softmax) == 1 identically, so only the value path is computed; the
        # query/key projections, scores, mask and softmax never influence the result.
        kv2 = dot(xkv, w_qkv)                      # linear_qkv on the key/value input
        hs = dot(dot(pairC, kv2), gr)              # per-(batch,head) value sums, dk-replicated
        x_att = dot(asmC, hs * maskC)              # transpose(1,2).view(B,S,H*dk) layout
        return dot(x_att, w_out)                   # linear_out (dropout p=0 -> identity)

    it = iter(param_refs)

    def nxt():
        return next(it)[...]

    # ---------------- encoder (its full value/FF/residual path reaches the output) ---
    x = xe_ref[...]
    for _ in range(N_LAYERS):
        w_qkv, w_out = nxt(), nxt()
        g1, be1, g2, be2 = nxt(), nxt(), nxt(), nxt()
        w1, bf1, w2, bf2 = nxt(), nxt(), nxt(), nxt()
        att = mha_value(x, w_qkv, w_out)           # self-attention (q == k == v == x)
        x1 = layer_norm(x + att, g1, be1)
        h = jnp.maximum(dot(x1, w1) + bf1, 0.0)    # feed-forward: Linear -> ReLU -> Linear
        ff = dot(h, w2) + bf2
        x = layer_norm(ff + x1, g2, be2)

    # ---------------- decoder --------------------------------------------------------
    # DecoderBlock returns its (shared) attention module applied to (query, enc, enc).
    # With the factorized einsum that output depends ONLY on enc_out (the query enters
    # solely through softmax row-sums == 1), so every decoder self-attention/norm1 and
    # every cross-attention except the LAST layer's is dead w.r.t. the output; only the
    # last layer's cross-attention value path is computed.
    w_qkv_d, w_out_d = nxt(), nxt()
    y = mha_value(x, w_qkv_d, w_out_d)

    fc_w, fc_b = nxt(), nxt()
    o_ref[...] = dot(y, fc_w) + fc_b               # (rows, V_PAD) lane-dense classifier


# ----------------------------- host-side wrapper ----------------------------------
def _flatten_params(params):
    flat = []
    for p in params["enc_layers"]:
        flat += [p["w_qkv"], p["w_out"],
                 p["g1"].reshape(1, D_MODEL), p["be1"].reshape(1, D_MODEL),
                 p["g2"].reshape(1, D_MODEL), p["be2"].reshape(1, D_MODEL),
                 p["w1"], p["b1"].reshape(1, D_FF),
                 p["w2"], p["b2"].reshape(1, D_MODEL)]
    # only the LAST decoder layer's attention weights reach the output (see kernel note)
    p_last = params["dec_layers"][-1]
    flat += [p_last["w_qkv"], p_last["w_out"]]
    fc_w_pad = jnp.zeros((D_MODEL, V_PAD), jnp.float32).at[:, :TRG_VOCAB].set(params["fc_w"])
    fc_b_pad = jnp.zeros((1, V_PAD), jnp.float32).at[0, :TRG_VOCAB].set(params["fc_b"])
    flat += [fc_w_pad, fc_b_pad]
    return flat


def _two_tensorcores():
    """True on chips with two TensorCores (v7x): shard the independent batches across them."""
    try:
        kind = str(jax.devices()[0].device_kind)
    except Exception:
        return False
    return "v7" in kind.lower()


def transformer_fwd(params, src, trg=None, *, split_batches=None):
    # `trg` only influences the reference output through softmax row-sums (identically
    # 1), so it never reaches the kernel; it is accepted to keep the module interface.
    del trg
    if split_batches is None:
        split_batches = _two_tensorcores()

    # embeddings + positional encoding (glue kept in plain JAX)
    xe = (jnp.take(params["enc_emb"], src, axis=0) + params["pe"][None, :S]).reshape(M, D_MODEL)

    nb = 1 if split_batches else B
    consts = [jnp.asarray(c) for c in build_value_path_constants(nb)]
    inputs = [xe] + consts + _flatten_params(params)
    out_shape = jax.ShapeDtypeStruct((M, V_PAD), jnp.float32)

    if not split_batches:
        # Single program, whole model resident in VMEM (best on 1-TC chips: v5e/v6e).
        vmem = pl.BlockSpec(memory_space=pltpu.MemorySpace.VMEM)
        out_pad = pl.pallas_call(
            _transformer_kernel,
            out_shape=out_shape,
            in_specs=[vmem] * len(inputs),
            out_specs=vmem,
        )(*inputs)
    else:
        # Grid over the (independent) batches; "parallel" lets multi-TC chips (v7x)
        # place one batch on each TensorCore.  Weights/constants are whole-array blocks.
        in_specs = [pl.BlockSpec((S, D_MODEL), lambda b: (b, 0))]
        in_specs += [pl.BlockSpec(tuple(a.shape), lambda b: (0, 0)) for a in inputs[1:]]
        out_pad = pl.pallas_call(
            _transformer_kernel,
            out_shape=out_shape,
            grid=(B,),
            in_specs=in_specs,
            out_specs=pl.BlockSpec((S, V_PAD), lambda b: (b, 0)),
            compiler_params=pltpu.CompilerParams(dimension_semantics=("parallel",)),
        )(*inputs)
    return out_pad[:, :TRG_VOCAB].reshape(B, T, TRG_VOCAB)


# ----------------------------- parameters ----------------------------------------
def make_pe(max_len, d_model):
    pos = jnp.arange(max_len, dtype=jnp.float32)[:, None]
    div = jnp.exp(jnp.arange(0, d_model, 2, dtype=jnp.float32) * -(math.log(10000.0) / d_model))
    pe = jnp.zeros((max_len, d_model), jnp.float32)
    pe = pe.at[:, 0::2].set(jnp.sin(pos * div))
    pe = pe.at[:, 1::2].set(jnp.cos(pos * div))
    return pe


def init_params(key):
    keys = iter(jax.random.split(key, 128))

    def nk():
        return next(keys)

    def lin(fi, fo):
        return jax.random.normal(nk(), (fi, fo), jnp.float32) / math.sqrt(fi)

    enc_layers = []
    for _ in range(N_LAYERS):
        enc_layers.append(dict(
            w_qkv=lin(D_MODEL, D_MODEL), w_out=lin(D_MODEL, D_MODEL),
            g1=jnp.ones((D_MODEL,), jnp.float32), be1=jnp.zeros((D_MODEL,), jnp.float32),
            g2=jnp.ones((D_MODEL,), jnp.float32), be2=jnp.zeros((D_MODEL,), jnp.float32),
            w1=lin(D_MODEL, D_FF), b1=jax.random.normal(nk(), (D_FF,), jnp.float32) * 0.01,
            w2=lin(D_FF, D_MODEL), b2=jax.random.normal(nk(), (D_MODEL,), jnp.float32) * 0.01,
        ))
    dec_layers = []
    for _ in range(N_LAYERS):
        # TODO(synk): DecoderBlock.__init__ also creates a TransformerBlock whose weights
        # are never used in forward(); they are intentionally not materialized here.
        dec_layers.append(dict(
            w_qkv=lin(D_MODEL, D_MODEL), w_out=lin(D_MODEL, D_MODEL),
            g1=jnp.ones((D_MODEL,), jnp.float32), be1=jnp.zeros((D_MODEL,), jnp.float32),
        ))
    return dict(
        enc_emb=jax.random.normal(nk(), (SRC_VOCAB, D_MODEL), jnp.float32),
        dec_emb=jax.random.normal(nk(), (TRG_VOCAB, D_MODEL), jnp.float32),
        enc_layers=enc_layers, dec_layers=dec_layers,
        fc_w=lin(D_MODEL, TRG_VOCAB),
        fc_b=jax.random.normal(nk(), (TRG_VOCAB,), jnp.float32) * 0.01,
        pe=make_pe(MAX_SEQ_LEN, D_MODEL),
    )


# ----------------------------- pure-JAX reference (literal translation) -----------
def _ref_layernorm(x, g, b):
    mean = x.mean(-1, keepdims=True)
    var = ((x - mean) ** 2).mean(-1, keepdims=True)
    return (x - mean) / jnp.sqrt(var + LN_EPS) * g + b


def _ref_mha(p, query, key_, value, mask):
    B2, Sq, D = query.shape
    Sk = key_.shape[1]
    dk = D // HEADS
    q = (query @ p["w_qkv"]).reshape(B2, HEADS, Sq, dk)
    k = (key_ @ p["w_qkv"]).reshape(B2, HEADS, Sk, dk)
    v = (value @ p["w_qkv"]).reshape(B2, HEADS, Sk, dk)
    scores = jnp.einsum("bhqd,bhkd->bhqk", q, k) / math.sqrt(dk)
    scores = jnp.where(mask == 0, -1e9, scores)
    pa = jax.nn.softmax(scores, axis=-1)
    x = jnp.einsum("bhqk,bhvd->bhqd", pa, v)      # literal: sums BOTH k and v, like torch
    x = x.transpose(0, 2, 1, 3).reshape(B2, Sq, D)
    return x @ p["w_out"]


def _ref_tblock(p, q, k, v, mask):
    att = _ref_mha(p, q, k, v, mask)
    x = _ref_layernorm(q + att, p["g1"], p["be1"])
    x_ff = jnp.maximum(x @ p["w1"] + p["b1"], 0.0) @ p["w2"] + p["b2"]
    return _ref_layernorm(x_ff + x, p["g2"], p["be2"])


def ref_transformer_fwd(params, src, trg):
    src_mask = (src != SRC_PAD)[:, None, None, :].astype(jnp.float32)
    Tlen = trg.shape[1]
    trg_mask = jnp.broadcast_to(jnp.tril(jnp.ones((Tlen, Tlen), jnp.float32)),
                                (trg.shape[0], 1, Tlen, Tlen))
    x = jnp.take(params["enc_emb"], src, axis=0) + params["pe"][None, : src.shape[1]]
    for p in params["enc_layers"]:
        x = _ref_tblock(p, x, x, x, src_mask)
    enc_out = x
    y = jnp.take(params["dec_emb"], trg, axis=0) + params["pe"][None, :Tlen]
    for p in params["dec_layers"]:
        att = _ref_mha(p, y, y, y, trg_mask)
        q = _ref_layernorm(y + att, p["g1"], p["be1"])
        y = _ref_mha(p, q, enc_out, enc_out, src_mask)
    return y @ params["fc_w"] + params["fc_b"]


# ----------------------------- main -----------------------------------------------
if __name__ == "__main__":
    key = jax.random.PRNGKey(0)
    kp, ks, kt = jax.random.split(key, 3)
    params = init_params(kp)

    src = jax.random.randint(ks, (B, S), 1, SRC_VOCAB)
    trg = jax.random.randint(kt, (B, T), 1, TRG_VOCAB)
    src = src.at[0, -2:].set(SRC_PAD)  # exercise src padding (mask only hits the softmax path)

    ref = ref_transformer_fwd(params, src, trg)

    # default path: auto-selects the batch-split (2-TensorCore) layout on v7x
    out = jax.block_until_ready(jax.jit(transformer_fwd)(params, src, trg))
    np.testing.assert_allclose(np.asarray(out), np.asarray(ref), rtol=2e-3, atol=2e-3)

    # exercise BOTH layouts regardless of the device generation
    out_fused = jax.block_until_ready(
        jax.jit(lambda p, s, t: transformer_fwd(p, s, t, split_batches=False))(params, src, trg))
    out_split = jax.block_until_ready(
        jax.jit(lambda p, s, t: transformer_fwd(p, s, t, split_batches=True))(params, src, trg))
    np.testing.assert_allclose(np.asarray(out_fused), np.asarray(ref), rtol=2e-3, atol=2e-3)
    np.testing.assert_allclose(np.asarray(out_split), np.asarray(ref), rtol=2e-3, atol=2e-3)

    print("KERNEL_OK")
</pallas_src>

<mosaic_0001>
module attributes {stable_mosaic.version = 11 : i64} {
  func.func @_transformer_kernel(%arg0: memref<16x32xf32, #tpu.memory_space<vmem>>, %arg1: memref<8x16xf32, #tpu.memory_space<vmem>>, %arg2: memref<16x8xf32, #tpu.memory_space<vmem>>, %arg3: memref<8x32xf32, #tpu.memory_space<vmem>>, %arg4: memref<32x32xf32, #tpu.memory_space<vmem>>, %arg5: memref<32x32xf32, #tpu.memory_space<vmem>>, %arg6: memref<32x32xf32, #tpu.memory_space<vmem>>, %arg7: memref<1x32xf32, #tpu.memory_space<vmem>>, %arg8: memref<1x32xf32, #tpu.memory_space<vmem>>, %arg9: memref<1x32xf32, #tpu.memory_space<vmem>>, %arg10: memref<1x32xf32, #tpu.memory_space<vmem>>, %arg11: memref<32x64xf32, #tpu.memory_space<vmem>>, %arg12: memref<1x64xf32, #tpu.memory_space<vmem>>, %arg13: memref<64x32xf32, #tpu.memory_space<vmem>>, %arg14: memref<1x32xf32, #tpu.memory_space<vmem>>, %arg15: memref<32x32xf32, #tpu.memory_space<vmem>>, %arg16: memref<32x32xf32, #tpu.memory_space<vmem>>, %arg17: memref<1x32xf32, #tpu.memory_space<vmem>>, %arg18: memref<1x32xf32, #tpu.memory_space<vmem>>, %arg19: memref<1x32xf32, #tpu.memory_space<vmem>>, %arg20: memref<1x32xf32, #tpu.memory_space<vmem>>, %arg21: memref<32x64xf32, #tpu.memory_space<vmem>>, %arg22: memref<1x64xf32, #tpu.memory_space<vmem>>, %arg23: memref<64x32xf32, #tpu.memory_space<vmem>>, %arg24: memref<1x32xf32, #tpu.memory_space<vmem>>, %arg25: memref<32x32xf32, #tpu.memory_space<vmem>>, %arg26: memref<32x32xf32, #tpu.memory_space<vmem>>, %arg27: memref<32x128xf32, #tpu.memory_space<vmem>>, %arg28: memref<1x128xf32, #tpu.memory_space<vmem>>, %arg29: memref<16x128xf32, #tpu.memory_space<vmem>>) attributes {dimension_semantics = [], scalar_prefetch = 0 : i64, scratch_operands = 0 : i64, tpu.core_type = #tpu.core_type<tc>} {
    %c0 = arith.constant 0 : index
    %c0_0 = arith.constant 0 : index
    %0 = vector.load %arg1[%c0, %c0_0] : memref<8x16xf32, #tpu.memory_space<vmem>>, vector<8x16xf32>
    %c0_1 = arith.constant 0 : index
    %c0_2 = arith.constant 0 : index
    %1 = vector.load %arg2[%c0_1, %c0_2] : memref<16x8xf32, #tpu.memory_space<vmem>>, vector<16x8xf32>
    %c0_3 = arith.constant 0 : index
    %c0_4 = arith.constant 0 : index
    %2 = vector.load %arg3[%c0_3, %c0_4] : memref<8x32xf32, #tpu.memory_space<vmem>>, vector<8x32xf32>
    %c0_5 = arith.constant 0 : index
    %c0_6 = arith.constant 0 : index
    %3 = vector.load %arg4[%c0_5, %c0_6] : memref<32x32xf32, #tpu.memory_space<vmem>>, vector<32x32xf32>
    %c0_7 = arith.constant 0 : index
    %c0_8 = arith.constant 0 : index
    %4 = vector.load %arg0[%c0_7, %c0_8] : memref<16x32xf32, #tpu.memory_space<vmem>>, vector<16x32xf32>
    %c0_9 = arith.constant 0 : index
    %c0_10 = arith.constant 0 : index
    %5 = vector.load %arg5[%c0_9, %c0_10] : memref<32x32xf32, #tpu.memory_space<vmem>>, vector<32x32xf32>
    %c0_11 = arith.constant 0 : index
    %c0_12 = arith.constant 0 : index
    %6 = vector.load %arg6[%c0_11, %c0_12] : memref<32x32xf32, #tpu.memory_space<vmem>>, vector<32x32xf32>
    %c0_13 = arith.constant 0 : index
    %c0_14 = arith.constant 0 : index
    %7 = vector.load %arg7[%c0_13, %c0_14] : memref<1x32xf32, #tpu.memory_space<vmem>>, vector<1x32xf32>
    %c0_15 = arith.constant 0 : index
    %c0_16 = arith.constant 0 : index
    %8 = vector.load %arg8[%c0_15, %c0_16] : memref<1x32xf32, #tpu.memory_space<vmem>>, vector<1x32xf32>
    %c0_17 = arith.constant 0 : index
    %c0_18 = arith.constant 0 : index
    %9 = vector.load %arg9[%c0_17, %c0_18] : memref<1x32xf32, #tpu.memory_space<vmem>>, vector<1x32xf32>
    %c0_19 = arith.constant 0 : index
    %c0_20 = arith.constant 0 : index
    %10 = vector.load %arg10[%c0_19, %c0_20] : memref<1x32xf32, #tpu.memory_space<vmem>>, vector<1x32xf32>
    %c0_21 = arith.constant 0 : index
    %c0_22 = arith.constant 0 : index
    %11 = vector.load %arg11[%c0_21, %c0_22] : memref<32x64xf32, #tpu.memory_space<vmem>>, vector<32x64xf32>
    %c0_23 = arith.constant 0 : index
    %c0_24 = arith.constant 0 : index
    %12 = vector.load %arg12[%c0_23, %c0_24] : memref<1x64xf32, #tpu.memory_space<vmem>>, vector<1x64xf32>
    %c0_25 = arith.constant 0 : index
    %c0_26 = arith.constant 0 : index
    %13 = vector.load %arg13[%c0_25, %c0_26] : memref<64x32xf32, #tpu.memory_space<vmem>>, vector<64x32xf32>
    %c0_27 = arith.constant 0 : index
    %c0_28 = arith.constant 0 : index
    %14 = vector.load %arg14[%c0_27, %c0_28] : memref<1x32xf32, #tpu.memory_space<vmem>>, vector<1x32xf32>
    %cst = arith.constant dense<0.000000e+00> : vector<16x32xf32>
    %15 = tpu.matmul %4, %5, %cst {dimension_numbers = #tpu.dot_dimension_numbers<[1], [0], [0], [1], [0, 0, 1, 1], [], []>} : vector<16x32xf32>, vector<32x32xf32>, vector<16x32xf32> -> vector<16x32xf32>
    %cst_29 = arith.constant dense<0.000000e+00> : vector<8x32xf32>
    %16 = tpu.matmul %0, %15, %cst_29 {dimension_numbers = #tpu.dot_dimension_numbers<[1], [0], [0], [1], [0, 0, 1, 1], [], []>} : vector<8x16xf32>, vector<16x32xf32>, vector<8x32xf32> -> vector<8x32xf32>
    %cst_30 = arith.constant dense<0.000000e+00> : vector<8x32xf32>
    %17 = tpu.matmul %16, %3, %cst_30 {dimension_numbers = #tpu.dot_dimension_numbers<[1], [0], [0], [1], [0, 0, 1, 1], [], []>} : vector<8x32xf32>, vector<32x32xf32>, vector<8x32xf32> -> vector<8x32xf32>
    %18 = arith.mulf %17, %2 : vector<8x32xf32>
    %cst_31 = arith.constant dense<0.000000e+00> : vector<16x32xf32>
    %19 = tpu.matmul %1, %18, %cst_31 {dimension_numbers = #tpu.dot_dimension_numbers<[1], [0], [0], [1], [0, 0, 1, 1], [], []>} : vector<16x8xf32>, vector<8x32xf32>, vector<16x32xf32> -> vector<16x32xf32>
    %cst_32 = arith.constant dense<0.000000e+00> : vector<16x32xf32>
    %20 = tpu.matmul %19, %6, %cst_32 {dimension_numbers = #tpu.dot_dimension_numbers<[1], [0], [0], [1], [0, 0, 1, 1], [], []>} : vector<16x32xf32>, vector<32x32xf32>, vector<16x32xf32> -> vector<16x32xf32>
    %21 = arith.addf %4, %20 : vector<16x32xf32>
    %cst_33 = arith.constant dense<0.000000e+00> : vector<16xf32>
    %22 = vector.multi_reduction <add>, %21, %cst_33 [1] : vector<16x32xf32> to vector<16xf32>
    %23 = vector.shape_cast %22 : vector<16xf32> to vector<16x1xf32>
    %cst_34 = arith.constant 3.200000e+01 : f32
    %24 = vector.broadcast %cst_34 : f32 to vector<16x1xf32>
    %25 = arith.divf %23, %24 : vector<16x1xf32>
    %26 = vector.broadcast %25 : vector<16x1xf32> to vector<16x32xf32>
    %27 = arith.subf %21, %26 : vector<16x32xf32>
    %28 = arith.mulf %27, %27 : vector<16x32xf32>
    %cst_35 = arith.constant dense<0.000000e+00> : vector<16xf32>
    %29 = vector.multi_reduction <add>, %28, %cst_35 [1] : vector<16x32xf32> to vector<16xf32>
    %30 = vector.shape_cast %29 : vector<16xf32> to vector<16x1xf32>
    %cst_36 = arith.constant 3.200000e+01 : f32
    %31 = vector.broadcast %cst_36 : f32 to vector<16x1xf32>
    %32 = arith.divf %30, %31 : vector<16x1xf32>
    %cst_37 = arith.constant 9.99999974E-6 : f32
    %33 = vector.broadcast %cst_37 : f32 to vector<16x1xf32>
    %34 = arith.addf %32, %33 : vector<16x1xf32>
    %35 = math.rsqrt %34 : vector<16x1xf32>
    %36 = vector.broadcast %35 : vector<16x1xf32> to vector<16x32xf32>
    %37 = arith.mulf %27, %36 : vector<16x32xf32>
    %38 = vector.broadcast %7 : vector<1x32xf32> to vector<16x32xf32>
    %39 = arith.mulf %37, %38 : vector<16x32xf32>
    %40 = vector.broadcast %8 : vector<1x32xf32> to vector<16x32xf32>
    %41 = arith.addf %39, %40 : vector<16x32xf32>
    %cst_38 = arith.constant dense<0.000000e+00> : vector<16x64xf32>
    %42 = tpu.matmul %41, %11, %cst_38 {dimension_numbers = #tpu.dot_dimension_numbers<[1], [0], [0], [1], [0, 0, 1, 1], [], []>} : vector<16x32xf32>, vector<32x64xf32>, vector<16x64xf32> -> vector<16x64xf32>
    %43 = vector.broadcast %12 : vector<1x64xf32> to vector<16x64xf32>
    %44 = arith.addf %42, %43 : vector<16x64xf32>
    %cst_39 = arith.constant 0.000000e+00 : f32
    %45 = vector.broadcast %cst_39 : f32 to vector<16x64xf32>
    %46 = arith.maximumf %44, %45 : vector<16x64xf32>
    %cst_40 = arith.constant dense<0.000000e+00> : vector<16x32xf32>
    %47 = tpu.matmul %46, %13, %cst_40 {dimension_numbers = #tpu.dot_dimension_numbers<[1], [0], [0], [1], [0, 0, 1, 1], [], []>} : vector<16x64xf32>, vector<64x32xf32>, vector<16x32xf32> -> vector<16x32xf32>
    %48 = vector.broadcast %14 : vector<1x32xf32> to vector<16x32xf32>
    %49 = arith.addf %47, %48 : vector<16x32xf32>
    %50 = arith.addf %49, %41 : vector<16x32xf32>
    %cst_41 = arith.constant dense<0.000000e+00> : vector<16xf32>
    %51 = vector.multi_reduction <add>, %50, %cst_41 [1] : vector<16x32xf32> to vector<16xf32>
    %52 = vector.shape_cast %51 : vector<16xf32> to vector<16x1xf32>
    %cst_42 = arith.constant 3.200000e+01 : f32
    %53 = vector.broadcast %cst_42 : f32 to vector<16x1xf32>
    %54 = arith.divf %52, %53 : vector<16x1xf32>
    %55 = vector.broadcast %54 : vector<16x1xf32> to vector<16x32xf32>
    %56 = arith.subf %50, %55 : vector<16x32xf32>
    %57 = arith.mulf %56, %56 : vector<16x32xf32>
    %cst_43 = arith.constant dense<0.000000e+00> : vector<16xf32>
    %58 = vector.multi_reduction <add>, %57, %cst_43 [1] : vector<16x32xf32> to vector<16xf32>
    %59 = vector.shape_cast %58 : vector<16xf32> to vector<16x1xf32>
    %cst_44 = arith.constant 3.200000e+01 : f32
    %60 = vector.broadcast %cst_44 : f32 to vector<16x1xf32>
    %61 = arith.divf %59, %60 : vector<16x1xf32>
    %cst_45 = arith.constant 9.99999974E-6 : f32
    %62 = vector.broadcast %cst_45 : f32 to vector<16x1xf32>
    %63 = arith.addf %61, %62 : vector<16x1xf32>
    %64 = math.rsqrt %63 : vector<16x1xf32>
    %65 = vector.broadcast %64 : vector<16x1xf32> to vector<16x32xf32>
    %66 = arith.mulf %56, %65 : vector<16x32xf32>
    %67 = vector.broadcast %9 : vector<1x32xf32> to vector<16x32xf32>
    %68 = arith.mulf %66, %67 : vector<16x32xf32>
    %69 = vector.broadcast %10 : vector<1x32xf32> to vector<16x32xf32>
    %70 = arith.addf %68, %69 : vector<16x32xf32>
    %c0_46 = arith.constant 0 : index
    %c0_47 = arith.constant 0 : index
    %71 = vector.load %arg15[%c0_46, %c0_47] : memref<32x32xf32, #tpu.memory_space<vmem>>, vector<32x32xf32>
    %c0_48 = arith.constant 0 : index
    %c0_49 = arith.constant 0 : index
    %72 = vector.load %arg16[%c0_48, %c0_49] : memref<32x32xf32, #tpu.memory_space<vmem>>, vector<32x32xf32>
    %c0_50 = arith.constant 0 : index
    %c0_51 = arith.constant 0 : index
    %73 = vector.load %arg17[%c0_50, %c0_51] : memref<1x32xf32, #tpu.memory_space<vmem>>, vector<1x32xf32>
    %c0_52 = arith.constant 0 : index
    %c0_53 = arith.constant 0 : index
    %74 = vector.load %arg18[%c0_52, %c0_53] : memref<1x32xf32, #tpu.memory_space<vmem>>, vector<1x32xf32>
    %c0_54 = arith.constant 0 : index
    %c0_55 = arith.constant 0 : index
    %75 = vector.load %arg19[%c0_54, %c0_55] : memref<1x32xf32, #tpu.memory_space<vmem>>, vector<1x32xf32>
    %c0_56 = arith.constant 0 : index
    %c0_57 = arith.constant 0 : index
    %76 = vector.load %arg20[%c0_56, %c0_57] : memref<1x32xf32, #tpu.memory_space<vmem>>, vector<1x32xf32>
    %c0_58 = arith.constant 0 : index
    %c0_59 = arith.constant 0 : index
    %77 = vector.load %arg21[%c0_58, %c0_59] : memref<32x64xf32, #tpu.memory_space<vmem>>, vector<32x64xf32>
    %c0_60 = arith.constant 0 : index
    %c0_61 = arith.constant 0 : index
    %78 = vector.load %arg22[%c0_60, %c0_61] : memref<1x64xf32, #tpu.memory_space<vmem>>, vector<1x64xf32>
    %c0_62 = arith.constant 0 : index
    %c0_63 = arith.constant 0 : index
    %79 = vector.load %arg23[%c0_62, %c0_63] : memref<64x32xf32, #tpu.memory_space<vmem>>, vector<64x32xf32>
    %c0_64 = arith.constant 0 : index
    %c0_65 = arith.constant 0 : index
    %80 = vector.load %arg24[%c0_64, %c0_65] : memref<1x32xf32, #tpu.memory_space<vmem>>, vector<1x32xf32>
    %cst_66 = arith.constant dense<0.000000e+00> : vector<16x32xf32>
    %81 = tpu.matmul %70, %71, %cst_66 {dimension_numbers = #tpu.dot_dimension_numbers<[1], [0], [0], [1], [0, 0, 1, 1], [], []>} : vector<16x32xf32>, vector<32x32xf32>, vector<16x32xf32> -> vector<16x32xf32>
    %cst_67 = arith.constant dense<0.000000e+00> : vector<8x32xf32>
    %82 = tpu.matmul %0, %81, %cst_67 {dimension_numbers = #tpu.dot_dimension_numbers<[1], [0], [0], [1], [0, 0, 1, 1], [], []>} : vector<8x16xf32>, vector<16x32xf32>, vector<8x32xf32> -> vector<8x32xf32>
    %cst_68 = arith.constant dense<0.000000e+00> : vector<8x32xf32>
    %83 = tpu.matmul %82, %3, %cst_68 {dimension_numbers = #tpu.dot_dimension_numbers<[1], [0], [0], [1], [0, 0, 1, 1], [], []>} : vector<8x32xf32>, vector<32x32xf32>, vector<8x32xf32> -> vector<8x32xf32>
    %84 = arith.mulf %83, %2 : vector<8x32xf32>
    %cst_69 = arith.constant dense<0.000000e+00> : vector<16x32xf32>
    %85 = tpu.matmul %1, %84, %cst_69 {dimension_numbers = #tpu.dot_dimension_numbers<[1], [0], [0], [1], [0, 0, 1, 1], [], []>} : vector<16x8xf32>, vector<8x32xf32>, vector<16x32xf32> -> vector<16x32xf32>
    %cst_70 = arith.constant dense<0.000000e+00> : vector<16x32xf32>
    %86 = tpu.matmul %85, %72, %cst_70 {dimension_numbers = #tpu.dot_dimension_numbers<[1], [0], [0], [1], [0, 0, 1, 1], [], []>} : vector<16x32xf32>, vector<32x32xf32>, vector<16x32xf32> -> vector<16x32xf32>
    %87 = arith.addf %70, %86 : vector<16x32xf32>
    %cst_71 = arith.constant dense<0.000000e+00> : vector<16xf32>
    %88 = vector.multi_reduction <add>, %87, %cst_71 [1] : vector<16x32xf32> to vector<16xf32>
    %89 = vector.shape_cast %88 : vector<16xf32> to vector<16x1xf32>
    %cst_72 = arith.constant 3.200000e+01 : f32
    %90 = vector.broadcast %cst_72 : f32 to vector<16x1xf32>
    %91 = arith.divf %89, %90 : vector<16x1xf32>
    %92 = vector.broadcast %91 : vector<16x1xf32> to vector<16x32xf32>
    %93 = arith.subf %87, %92 : vector<16x32xf32>
    %94 = arith.mulf %93, %93 : vector<16x32xf32>
    %cst_73 = arith.constant dense<0.000000e+00> : vector<16xf32>
    %95 = vector.multi_reduction <add>, %94, %cst_73 [1] : vector<16x32xf32> to vector<16xf32>
    %96 = vector.shape_cast %95 : vector<16xf32> to vector<16x1xf32>
    %cst_74 = arith.constant 3.200000e+01 : f32
    %97 = vector.broadcast %cst_74 : f32 to vector<16x1xf32>
    %98 = arith.divf %96, %97 : vector<16x1xf32>
    %cst_75 = arith.constant 9.99999974E-6 : f32
    %99 = vector.broadcast %cst_75 : f32 to vector<16x1xf32>
    %100 = arith.addf %98, %99 : vector<16x1xf32>
    %101 = math.rsqrt %100 : vector<16x1xf32>
    %102 = vector.broadcast %101 : vector<16x1xf32> to vector<16x32xf32>
    %103 = arith.mulf %93, %102 : vector<16x32xf32>
    %104 = vector.broadcast %73 : vector<1x32xf32> to vector<16x32xf32>
    %105 = arith.mulf %103, %104 : vector<16x32xf32>
    %106 = vector.broadcast %74 : vector<1x32xf32> to vector<16x32xf32>
    %107 = arith.addf %105, %106 : vector<16x32xf32>
    %cst_76 = arith.constant dense<0.000000e+00> : vector<16x64xf32>
    %108 = tpu.matmul %107, %77, %cst_76 {dimension_numbers = #tpu.dot_dimension_numbers<[1], [0], [0], [1], [0, 0, 1, 1], [], []>} : vector<16x32xf32>, vector<32x64xf32>, vector<16x64xf32> -> vector<16x64xf32>
    %109 = vector.broadcast %78 : vector<1x64xf32> to vector<16x64xf32>
    %110 = arith.addf %108, %109 : vector<16x64xf32>
    %cst_77 = arith.constant 0.000000e+00 : f32
    %111 = vector.broadcast %cst_77 : f32 to vector<16x64xf32>
    %112 = arith.maximumf %110, %111 : vector<16x64xf32>
    %cst_78 = arith.constant dense<0.000000e+00> : vector<16x32xf32>
    %113 = tpu.matmul %112, %79, %cst_78 {dimension_numbers = #tpu.dot_dimension_numbers<[1], [0], [0], [1], [0, 0, 1, 1], [], []>} : vector<16x64xf32>, vector<64x32xf32>, vector<16x32xf32> -> vector<16x32xf32>
    %114 = vector.broadcast %80 : vector<1x32xf32> to vector<16x32xf32>
    %115 = arith.addf %113, %114 : vector<16x32xf32>
    %116 = arith.addf %115, %107 : vector<16x32xf32>
    %cst_79 = arith.constant dense<0.000000e+00> : vector<16xf32>
    %117 = vector.multi_reduction <add>, %116, %cst_79 [1] : vector<16x32xf32> to vector<16xf32>
    %118 = vector.shape_cast %117 : vector<16xf32> to vector<16x1xf32>
    %cst_80 = arith.constant 3.200000e+01 : f32
    %119 = vector.broadcast %cst_80 : f32 to vector<16x1xf32>
    %120 = arith.divf %118, %119 : vector<16x1xf32>
    %121 = vector.broadcast %120 : vector<16x1xf32> to vector<16x32xf32>
    %122 = arith.subf %116, %121 : vector<16x32xf32>
    %123 = arith.mulf %122, %122 : vector<16x32xf32>
    %cst_81 = arith.constant dense<0.000000e+00> : vector<16xf32>
    %124 = vector.multi_reduction <add>, %123, %cst_81 [1] : vector<16x32xf32> to vector<16xf32>
    %125 = vector.shape_cast %124 : vector<16xf32> to vector<16x1xf32>
    %cst_82 = arith.constant 3.200000e+01 : f32
    %126 = vector.broadcast %cst_82 : f32 to vector<16x1xf32>
    %127 = arith.divf %125, %126 : vector<16x1xf32>
    %cst_83 = arith.constant 9.99999974E-6 : f32
    %128 = vector.broadcast %cst_83 : f32 to vector<16x1xf32>
    %129 = arith.addf %127, %128 : vector<16x1xf32>
    %130 = math.rsqrt %129 : vector<16x1xf32>
    %131 = vector.broadcast %130 : vector<16x1xf32> to vector<16x32xf32>
    %132 = arith.mulf %122, %131 : vector<16x32xf32>
    %133 = vector.broadcast %75 : vector<1x32xf32> to vector<16x32xf32>
    %134 = arith.mulf %132, %133 : vector<16x32xf32>
    %135 = vector.broadcast %76 : vector<1x32xf32> to vector<16x32xf32>
    %136 = arith.addf %134, %135 : vector<16x32xf32>
    %c0_84 = arith.constant 0 : index
    %c0_85 = arith.constant 0 : index
    %137 = vector.load %arg25[%c0_84, %c0_85] : memref<32x32xf32, #tpu.memory_space<vmem>>, vector<32x32xf32>
    %c0_86 = arith.constant 0 : index
    %c0_87 = arith.constant 0 : index
    %138 = vector.load %arg26[%c0_86, %c0_87] : memref<32x32xf32, #tpu.memory_space<vmem>>, vector<32x32xf32>
    %cst_88 = arith.constant dense<0.000000e+00> : vector<16x32xf32>
    %139 = tpu.matmul %136, %137, %cst_88 {dimension_numbers = #tpu.dot_dimension_numbers<[1], [0], [0], [1], [0, 0, 1, 1], [], []>} : vector<16x32xf32>, vector<32x32xf32>, vector<16x32xf32> -> vector<16x32xf32>
    %cst_89 = arith.constant dense<0.000000e+00> : vector<8x32xf32>
    %140 = tpu.matmul %0, %139, %cst_89 {dimension_numbers = #tpu.dot_dimension_numbers<[1], [0], [0], [1], [0, 0, 1, 1], [], []>} : vector<8x16xf32>, vector<16x32xf32>, vector<8x32xf32> -> vector<8x32xf32>
    %cst_90 = arith.constant dense<0.000000e+00> : vector<8x32xf32>
    %141 = tpu.matmul %140, %3, %cst_90 {dimension_numbers = #tpu.dot_dimension_numbers<[1], [0], [0], [1], [0, 0, 1, 1], [], []>} : vector<8x32xf32>, vector<32x32xf32>, vector<8x32xf32> -> vector<8x32xf32>
    %142 = arith.mulf %141, %2 : vector<8x32xf32>
    %cst_91 = arith.constant dense<0.000000e+00> : vector<16x32xf32>
    %143 = tpu.matmul %1, %142, %cst_91 {dimension_numbers = #tpu.dot_dimension_numbers<[1], [0], [0], [1], [0, 0, 1, 1], [], []>} : vector<16x8xf32>, vector<8x32xf32>, vector<16x32xf32> -> vector<16x32xf32>
    %cst_92 = arith.constant dense<0.000000e+00> : vector<16x32xf32>
    %144 = tpu.matmul %143, %138, %cst_92 {dimension_numbers = #tpu.dot_dimension_numbers<[1], [0], [0], [1], [0, 0, 1, 1], [], []>} : vector<16x32xf32>, vector<32x32xf32>, vector<16x32xf32> -> vector<16x32xf32>
    %c0_93 = arith.constant 0 : index
    %c0_94 = arith.constant 0 : index
    %145 = vector.load %arg27[%c0_93, %c0_94] : memref<32x128xf32, #tpu.memory_space<vmem>>, vector<32x128xf32>
    %c0_95 = arith.constant 0 : index
    %c0_96 = arith.constant 0 : index
    %146 = vector.load %arg28[%c0_95, %c0_96] : memref<1x128xf32, #tpu.memory_space<vmem>>, vector<1x128xf32>
    %cst_97 = arith.constant dense<0.000000e+00> : vector<16x128xf32>
    %147 = tpu.matmul %144, %145, %cst_97 {dimension_numbers = #tpu.dot_dimension_numbers<[1], [0], [0], [1], [0, 0, 1, 1], [], []>} : vector<16x32xf32>, vector<32x128xf32>, vector<16x128xf32> -> vector<16x128xf32>
    %148 = vector.broadcast %146 : vector<1x128xf32> to vector<16x128xf32>
    %149 = arith.addf %147, %148 : vector<16x128xf32>
    %c0_98 = arith.constant 0 : index
    %c0_99 = arith.constant 0 : index
    %150 = vector.load %arg29[%c0_98, %c0_99] : memref<16x128xf32, #tpu.memory_space<vmem>>, vector<16x128xf32>
    tpu.vector_store %arg29[%c0_98, %c0_99], %149 {strides = array<i32>} : memref<16x128xf32, #tpu.memory_space<vmem>>, vector<16x128xf32>,
    return
  }
}

</mosaic_0001>

<bundles_post_ra>
// kernel: transformer_fwd.1
= control target key start
LH: loop header
LB: loop body
LE: loop exit
PB: predicated region body
PF: predicated region fallthrough
CT: control target
= control target key end

     0   :  { %s2543_s3 = smov 5   ;;  %vm158_vm0 = vcmask 261120   ;;  %v2544_v8 = vmov 0.0|0.0   ;;  %vm2545_vm1 = vmmov 0   ;;  %v2546_v9 = vmov 0.0   ;;  %s2547_s10 = smov 4   ;;  %s2799_s0 = inlined_call_operand.smem [shape: u32[30], index: -1, kind: input, shape index: {}] }
   0x1   :  { %s1979_s6 = sld [smem:[%s2799_s0 + %s2543_s3]]   ;;  %2372 = vmatprep.subr.bf16.mxu1 %v2544_v8  ;;  %2173 = vmatprep.mubr.msk.f32.mxu1 %vm2545_vm1, %v2546_v9  ;;  %s2548_s14 = smov 1   ;;  %vm240_vm2 = vcmask 130048   ;;  %vm388_vm3 = vcmask 64512   ;;  %vm691_vm4 = vcmask 523264  }
   0x2   :  { %s1_s9 = sld [smem:[%s2799_s0]]   ;;  %s2549_s18 = smov 2  }
   0x3   :  { %s1978_s13 = sld [smem:[%s2799_s0 + %s2547_s10]]   ;;  %s2550_s22 = smov 3  }
   0x4   :  { %s1975_s17 = sld [smem:[%s2799_s0 + %s2548_s14]]   ;;  %s2551_s26 = smov 6  }
   0x5   :  { %s1976_s21 = sld [smem:[%s2799_s0 + %s2549_s18]]   ;;  %s2552_s30 = smov 11  }
   0x6   :  { %s1977_s25 = sld [smem:[%s2799_s0 + %s2550_s22]]   ;;  %s2553_s4 = smov 13  }
   0x7   :  { %v132_v0 = vld [vmem:[%s1979_s6] sm:$0xff]  ;;  %v133_v1 = vld [vmem:[%s1979_s6 + $0x8] sm:$0xff]  ;;  %v134_v2 = vld [vmem:[%s1979_s6 + $0x10] sm:$0xff]  ;;  %s1980_s29 = sld [smem:[%s2799_s0 + %s2551_s26]]   ;;  %s2554_s8 = smov 7  }
   0x8   :  { %v2364_v3 = vpack.c.bf16 %v133_v1, %v132_v0  ;;  %v135_v4 = vld [vmem:[%s1979_s6 + $0x18] sm:$0xff]  ;;  %v2586_v5 = vld [vmem:[%s1_s9] sm:$0xff]  ;;  %v2590_v7 = vld [vmem:[%s1_s9 + $0x8] sm:$0xff]  ;;  %s1985_s3 = sld [smem:[%s2799_s0 + %s2552_s30]]   ;;  %s2555_s12 = smov 8  }
   0x9   :  { %v2368_v6 = vpack.c.bf16 %v135_v4, %v134_v2  ;;  %2166 = vmatprep.mubr.msk.f32.mxu0 %vm158_vm0, %v2586_v5  ;;  %v126_v12 = vld [vmem:[%s1978_s13] sm:$0xff]  ;;  %v127_v13 = vld [vmem:[%s1978_s13 + $0x8] sm:$0xff]  ;;  %v128_v17 = vld [vmem:[%s1978_s13 + $0x10] sm:$0xff]  ;;  %s2652_s7 = sld [smem:[%s2799_s0 + %s2553_s4]]   ;;  %s2556_s16 = smov 12  }
   0xa   :  { %2365 = vmatprep.subr.bf16.mxu0 %v2364_v3  ;;  %v2603_v15 = vld [vmem:[%s1975_s17] sm:$0xff]  ;;  %v2605_v16 = vpack.c.bf16 %v127_v13, %v126_v12  ;;  %v129_v18 = vld [vmem:[%s1978_s13 + $0x18] sm:$0xff]  ;;  %s1981_s11 = sld [smem:[%s2799_s0 + %s2554_s8]]   ;;  %s2557_s20 = smov 14  }
   0xb   :  { %2367 = vmatpush3.bf16.msra.mxu0 %v2364_v3  ;;  %v2611_v19 = vpack.c.bf16 %v129_v18, %v128_v17  ;;  %v2621_v22 = vld [vmem:[%s1976_s21] sm:$0xff]  ;;  %v2634_v32 = vld [vmem:[%s1976_s21 + $0x8] sm:$0xff]  ;;  %s1982_s15 = sld [smem:[%s2799_s0 + %s2555_s12]]   ;;  %s2558_s24 = smov 15  }
   0xc   :  { %2369 = vmatprep.subr.bf16.mxu0 %v2368_v6  ;;  %v2631_v23 = vld [vmem:[%s1977_s25] sm:$0xff]  ;;  %s1986_s19 = sld [smem:[%s2799_s0 + %s2556_s16]]   ;;  %s2559_s28 = smov 9  }
   0xd   :  { %v136_v24 = vld [vmem:[%s1980_s29] sm:$0xff]  ;;  %v137_v25 = vld [vmem:[%s1980_s29 + $0x8] sm:$0xff]  ;;  %v138_v27 = vld [vmem:[%s1980_s29 + $0x10] sm:$0xff]  ;;  %s1988_s23 = sld [smem:[%s2799_s0 + %s2557_s20]]   ;;  %s2560_s2 = smov 10  }
   0xe   :  { %v139_v28 = vld [vmem:[%s1980_s29 + $0x18] sm:$0xff]  ;;  %v2381_v31 = vpack.c.bf16 %v137_v25, %v136_v24  ;;  %v144_v52 = vld [vmem:[%s1985_s3] sm:$0xff]  ;;  %v145_v53 = vld [vmem:[%s1985_s3 + $0x8] sm:$0xff]  ;;  %s1989_s27 = sld [smem:[%s2799_s0 + %s2558_s24]]   ;;  %s2561_s6 = smov 16  }
   0xf   :  { %2371 = vmatpush3.bf16.msra.mxu0 %v2368_v6  ;;  %v2385_v33 = vpack.c.bf16 %v139_v28, %v138_v27  ;;  %v2389_v54 = vpack.c.bf16 %v145_v53, %v144_v52  ;;  %v146_v55 = vld [vmem:[%s1985_s3 + $0x10] sm:$0xff]  ;;  %v147_v56 = vld [vmem:[%s1985_s3 + $0x18] sm:$0xff]  ;;  %v149_v58 = vld [vmem:[%s2652_s7] sm:$0xff]  ;;  %s1983_s1 = sld [smem:[%s2799_s0 + %s2559_s28]]   ;;  %s2562_s10 = smov 21  }
  0x10   :  { %v2393_v57 = vpack.c.bf16 %v147_v56, %v146_v55  ;;  %v150_v59 = vld [vmem:[%s2652_s7 + $0x8] sm:$0xff]  ;;  %v151_v60 = vld [vmem:[%s2652_s7 + $0x10] sm:$0xff]  ;;  %v152_v62 = vld [vmem:[%s2652_s7 + $0x18] sm:$0xff]  ;;  %s1984_s5 = sld [smem:[%s2799_s0 + %s2560_s2]]   ;;  %s2563_s14 = smov 23  }
  0x11   :  { %v2397_v61 = vpack.c.bf16 %v150_v59, %v149_v58  ;;  %v2401_v63 = vpack.c.bf16 %v152_v62, %v151_v60  ;;  %v153_v0 = vld [vmem:[%s2652_s7 + $0x20] sm:$0xff]  ;;  %v154_v1 = vld [vmem:[%s2652_s7 + $0x28] sm:$0xff]  ;;  %v156_v27 = vld [vmem:[%s2652_s7 + $0x38] sm:$0xff]  ;;  %s1990_s9 = sld [smem:[%s2799_s0 + %s2561_s6]]   ;;  %s2564_s18 = smov 17  }
  0x12   :  { %2167 = vmatmul.mubr.msk.f32.vlgmr.msra.gmra.mrb[0].mxu0 %vm158_vm0, %v2590_v7  ;;  %v2405_v2 = vpack.c.bf16 %v154_v1, %v153_v0  ;;  %v2012_v12 = vld [vmem:[%s1981_s11] ss:$0 sm:$0xff]  ;;  %s1995_s13 = sld [smem:[%s2799_s0 + %s2562_s10]]   ;;  %s2565_s22 = smov 18  }
  0x13   :  { %2189 = vmatprep.mubr.msk.f32.mxu0 %vm388_vm3, %v2621_v22  ;;  %s2725_s17 = sld [smem:[%s2799_s0 + %s2563_s14]]   ;;  %s2566_s26 = smov 22  }
  0x14   :  { %v817_v56 = vld [vmem:[%s1989_s27] sm:$0xff]  ;;  %v819_v59 = vld [vmem:[%s1989_s27 + $0x10] sm:$0xff]  ;;  %v820_v60 = vld [vmem:[%s1989_s27 + $0x18] sm:$0xff]  ;;  %s1991_s21 = sld [smem:[%s2799_s0 + %s2564_s18]]   ;;  %s2567_s30 = smov 24  }
  0x15   :  { %s1992_s25 = sld [smem:[%s2799_s0 + %s2565_s22]]   ;;  %s2568_s4 = smov 25  }
  0x16   :  { %s1996_s29 = sld [smem:[%s2799_s0 + %s2566_s26]]   ;;  %s2569_s8 = smov 19  }
  0x17   :  { %s1998_s3 = sld [smem:[%s2799_s0 + %s2567_s30]]   ;;  %s2570_s12 = smov 20  }
  0x18   :  { %s1993_s11 = sld [smem:[%s2799_s0 + %s2569_s8]]   ;;  %s2571_s16 = smov 26  }
  0x19   :  { %s2572_s20 = smov 27   ;;  %s2573_s24 = smov 28  }
  0x1a   :  { %s2574_s28 = smov 29  }
  0xe5   :  { %v2168_v10 = vpop.f32.mrb[0].mxu0 }
  0xe6   :  { %v231_v11 = vpop.f32.mrb[1].mxu0 }
  0xe7   :  { %v2373_v14 = vpack.c.bf16 %v2168_v10, %v231_v11 }
  0xe9   :  { %2374 = vmatpush3.bf16.msra.mxu1 %v2373_v14  ;;  %v2013_v14 = vld [vmem:[%s1982_s15] ss:$0 sm:$0xff]  ;;  %s1994_s15 = sld [smem:[%s2799_s0 + %s2570_s12]]  }
  0xea   :  { %2375 = vmatprep.subr.bf16.mxu1 %v2544_v8 }
  0xec   :  { %2174 = vmatmul.mubr.msk.f32.vlgmr.msra.gmra.mrb[0].mxu1 %vm240_vm2, %v2603_v15 }
  0xed   :  { %2377 = vmatpush3.bf16.msra.mxu1 %v2605_v16  ;;  %2184 = vmatprep.mubr.msk.f32.mxu1 %vm2545_vm1, %v2546_v9 }
  0xee   :  { %2378 = vmatprep.subr.bf16.mxu1 %v2544_v8 }
  0xf1   :  { %2380 = vmatpush3.bf16.msra.mxu1 %v2611_v19 }
  0xf2   :  { %2390 = vmatprep.subr.bf16.mxu1 %v2389_v54 }
 0x1bf   :  { %v310_v20 = vpop.f32.mrb[0].mxu1 }
 0x1c0   :  { %v2175_v21 = vpop.f32.mrb[1].mxu1  ;;  %2185 = vmatmul.mubr.msk.f32.vlgmr.msra.gmra.mrb[2].mxu1 %vm158_vm0, %v310_v20 }
 0x1c1   :  { %2392 = vmatpush3.bf16.msra.mxu1 %v2389_v54 }
 0x1c2   :  { %2394 = vmatprep.subr.bf16.mxu1 %v2393_v57 }
 0x1c5   :  { %2396 = vmatpush3.bf16.msra.mxu1 %v2393_v57  ;;  %v818_v57 = vld [vmem:[%s1989_s27 + $0x8] sm:$0xff]  ;;  %s2002_s27 = sld [smem:[%s2799_s0 + %s2573_s24]]  }
 0x1c6   :  { %v2413_v58 = vpack.c.bf16 %v818_v57, %v817_v56  ;;  %v831_v57 = vld [vmem:[%s1995_s13 + $0x10] sm:$0xff] }
 0x1c8   :  { %2414 = vmatprep.subr.bf16.mxu1 %v2413_v58 }
 0x293   :  { %v383_v26 = vpop.f32.mrb[2].mxu1 }
 0x294   :  { %v387_v29 = vmul.f32 %v383_v26, %v2631_v23  ;;  %v2186_v30 = vpop.f32.mrb[3].mxu1  ;;  %v155_v26 = vld [vmem:[%s2652_s7 + $0x30] sm:$0xff]  ;;  %s1999_s7 = sld [smem:[%s2799_s0 + %s2568_s4]]  }
 0x295   :  { %v2409_v28 = vpack.c.bf16 %v156_v27, %v155_v26  ;;  %v821_v26 = vld [vmem:[%s1990_s9] sm:$0xff]  ;;  %v822_v27 = vld [vmem:[%s1990_s9 + $0x8] sm:$0xff] }
 0x296   :  { %2187 = vmatprep.subr.mxu0 %v387_v29 }
 0x297   :  { %2188 = vmatpush3.msra.mxu0 %v387_v29  ;;  %v2014_v29 = vld [vmem:[%s1986_s19] ss:$0 sm:$0xff]  ;;  %s2000_s19 = sld [smem:[%s2799_s0 + %s2571_s16]]  }
 0x298   :  { %2190 = vmatmul.mubr.msk.f32.vlgmr.msra.gmra.mrb[2].mxu0 %vm388_vm3, %v2634_v32  ;;  %2382 = vmatprep.subr.bf16.mxu0 %v2381_v31 }
 0x299   :  { %2384 = vmatpush3.bf16.msra.mxu0 %v2381_v31 }
 0x29a   :  { %2386 = vmatprep.subr.bf16.mxu0 %v2385_v33 }
 0x29d   :  { %2388 = vmatpush3.bf16.msra.mxu0 %v2385_v33 }
 0x29e   :  { %2398 = vmatprep.subr.bf16.mxu0 %v2397_v61 }
 0x36b   :  { %v2191_v34 = vpop.f32.mrb[2].mxu0 }
 0x36c   :  { %v461_v35 = vpop.f32.mrb[3].mxu0 }
 0x36d   :  { %2200 = vmatprep.mubr.msk.f32.mxu0 %vm158_vm0, %v461_v35 }
 0x36e   :  { %2201 = vmatmul.mubr.msk.f32.vlgmr.msra.gmra.mrb[4].mxu0 %vm158_vm0, %v2191_v34 }
 0x36f   :  { %2400 = vmatpush3.bf16.msra.mxu0 %v2397_v61  ;;  %v2417_v61 = vpack.c.bf16 %v820_v60, %v819_v59  ;;  %v834_v60 = vld [vmem:[%s2725_s17] sm:$0xff] }
 0x370   :  { %2402 = vmatprep.subr.bf16.mxu0 %v2401_v63 }
 0x373   :  { %2404 = vmatpush3.bf16.msra.mxu0 %v2401_v63 }
 0x374   :  { %2406 = vmatprep.subr.bf16.mxu0 %v2405_v2 }
 0x377   :  { %2408 = vmatpush3.bf16.msra.mxu0 %v2405_v2 }
 0x378   :  { %2410 = vmatprep.subr.bf16.mxu0 %v2409_v28 }
 0x37b   :  { %2412 = vmatpush3.bf16.msra.mxu0 %v2409_v28 }
 0x441   :  { %v2202_v36 = vpop.f32.mrb[4].mxu0 }
 0x442   :  { %v542_v37 = vpop.f32.mrb[5].mxu0  ;;  %v552_v39 = vadd.f32 %v2202_v36, %v2590_v7 }
 0x443   :  { %v551_v38 = vadd.f32 %v542_v37, %v2586_v5  ;;  %v2017_v37 = vld [vmem:[%s1988_s23] ss:$0 sm:$0xff]  ;;  %s2001_s23 = sld [smem:[%s2799_s0 + %s2572_s20]]  }
 0x444   :  { %v556_v41 = vsel %vm158_vm0, %v552_v39, 0.0 }
 0x445   :  { %v553_v40 = vsel %vm158_vm0, %v551_v38, 0.0 }
 0x446   :  { %554 = vadd.xlane.f32.xlu0 %v553_v40 }
 0x44a   :  { %557 = vadd.xlane.f32.xlu0 %v556_v41 }
 0x4d3   :  { %v555_v42 = vpop.xlane.xlu0 %554 }
 0x4d4   :  { %v560_v43 = vmul.f32 0.03125, %v555_v42 }
 0x4d6   :  { %v562_v44 = vsub.f32 %v551_v38, %v560_v43 }
 0x4d7   :  { %v558_v45 = vpop.xlane.xlu0 %557 }
 0x4d8   :  { %v561_v46 = vmul.f32 0.03125, %v558_v45  ;;  %v564_v47 = vmul.f32 %v562_v44, %v562_v44 }
 0x4da   :  { %v563_v48 = vsub.f32 %v552_v39, %v561_v46  ;;  %v566_v49 = vsel %vm158_vm0, %v564_v47, 0.0 }
 0x4db   :  { %567 = vadd.xlane.f32.xlu1 %v566_v49 }
 0x4dc   :  { %v565_v50 = vmul.f32 %v563_v48, %v563_v48 }
 0x4de   :  { %v569_v51 = vsel %vm158_vm0, %v565_v50, 0.0 }
 0x4df   :  { %570 = vadd.xlane.f32.xlu1 %v569_v51 }
 0x568   :  { %v568_v3 = vpop.xlane.xlu1 %567 }
 0x569   :  { %v572_v4 = vmul.f32 0.03125, %v568_v3 }
 0x56b   :  { %v574_v5 = vadd.f32 1e-05, %v572_v4 }
 0x56c   :  { %v571_v6 = vpop.xlane.xlu1 %570 }
 0x56d   :  { %2527 = vrsqrt.f32 %v574_v5  ;;  %v573_v7 = vmul.f32 0.03125, %v571_v6  ;;  %v2020_v5 = vld [vmem:[%s1983_s1] ss:$0 sm:$0xff]  ;;  %s2003_s1 = sld [smem:[%s2799_s0 + %s2574_s28]]  }
 0x56f   :  { %v575_v10 = vadd.f32 1e-05, %v573_v7 }
 0x571   :  { %2529 = vrsqrt.f32 %v575_v10 }
 0x577   :  { %v2528_v11 = vpop.eup %2527 }
 0x578   :  { %v578_v13 = vmul.f32 %v2528_v11, %v562_v44  ;;  %v2021_v11 = vld [vmem:[%s1984_s5] ss:$0 sm:$0xff] }
 0x57a   :  { %v586_v17 = vmul.f32 %v2012_v12, %v578_v13 }
 0x57b   :  { %v2530_v18 = vpop.eup %2529 }
 0x57c   :  { %v579_v20 = vmul.f32 %v2530_v18, %v563_v48  ;;  %v594_v21 = vadd.f32 %v2013_v14, %v586_v17 }
 0x57e   :  { %v587_v24 = vmul.f32 %v2012_v12, %v579_v20  ;;  %2211 = vmatprep.mubr.msk.f32.mxu1 %vm158_vm0, %v594_v21 }
 0x580   :  { %v595_v25 = vadd.f32 %v2013_v14, %v587_v24 }
 0x582   :  { %2212 = vmatmul.mubr.msk.f32.vlgmr.msra.gmra.mrb[4].mxu1 %vm158_vm0, %v595_v25 }
 0x583   :  { %2416 = vmatpush3.bf16.msra.mxu1 %v2413_v58  ;;  %v832_v58 = vld [vmem:[%s1995_s13 + $0x18] sm:$0xff] }
 0x584   :  { %2418 = vmatprep.subr.bf16.mxu1 %v2417_v61  ;;  %v2442_v59 = vpack.c.bf16 %v832_v58, %v831_v57  ;;  %v1488_v57 = vld [vmem:[%s1999_s7] sm:$0xff]  ;;  %v1489_v58 = vld [vmem:[%s1999_s7 + $0x8] sm:$0xff] }
 0x587   :  { %2420 = vmatpush3.bf16.msra.mxu1 %v2417_v61  ;;  %v835_v61 = vld [vmem:[%s2725_s17 + $0x8] sm:$0xff] }
 0x588   :  { %2421 = vmatprep.subr.bf16.mxu1 %v2544_v8 }
 0x655   :  { %v2213_v30 = vpop.f32.mrb[4].mxu1 }
 0x656   :  { %v680_v31 = vadd.f32 %v2213_v30, %v2014_v29  ;;  %v674_v33 = vpop.f32.mrb[5].mxu1  ;;  %v824_v30 = vld [vmem:[%s1990_s9 + $0x18] sm:$0xff] }
 0x657   :  { %v675_v34 = vadd.f32 %v2014_v29, %v674_v33  ;;  %v823_v29 = vld [vmem:[%s1990_s9 + $0x10] sm:$0xff] }
 0x658   :  { %v684_v36 = vmax.f32 %v680_v31, 0.0 }
 0x659   :  { %v683_v35 = vmax.f32 %v675_v34, 0.0  ;;  %v2430_v34 = vpack.c.bf16 %v822_v27, %v821_v26 }
 0x65b   :  { %2230 = vmatprep.mubr.msk.f32.mxu0 %vm691_vm4, %v683_v35  ;;  %v2434_v35 = vpack.c.bf16 %v824_v30, %v823_v29  ;;  %v841_v29 = vld [vmem:[%s2725_s17 + $0x38] sm:$0xff] }
 0x65c   :  { %2231 = vmatmul.mubr.msk.f32.vlgmr.msra.gmra.mrb[6].mxu0 %vm691_vm4, %v684_v36 }
 0x65d   :  { %2264 = vmatprep.mubr.msk.f32.mxu0 %vm388_vm3, %v2621_v22 }
 0x72f   :  { %v2232_v38 = vpop.f32.mrb[6].mxu0 }
 0x730   :  { %v770_v39 = vadd.f32 %v2232_v38, %v2017_v37  ;;  %v764_v40 = vpop.f32.mrb[7].mxu0 }
 0x731   :  { %v765_v41 = vadd.f32 %v2017_v37, %v764_v40 }
 0x732   :  { %v774_v42 = vadd.f32 %v770_v39, %v595_v25 }
 0x733   :  { %v773_v43 = vadd.f32 %v765_v41, %v594_v21 }
 0x734   :  { %v778_v44 = vsel %vm158_vm0, %v774_v42, 0.0 }
 0x735   :  { %779 = vadd.xlane.f32.xlu1 %v778_v44  ;;  %v775_v45 = vsel %vm158_vm0, %v773_v43, 0.0 }
 0x736   :  { %776 = vadd.xlane.f32.xlu0 %v775_v45 }
 0x7c2   :  { %v780_v46 = vpop.xlane.xlu1 %779 }
 0x7c3   :  { %v782_v47 = vmul.f32 0.03125, %v780_v46  ;;  %v777_v48 = vpop.xlane.xlu0 %776 }
 0x7c4   :  { %v781_v49 = vmul.f32 0.03125, %v777_v48 }
 0x7c5   :  { %v784_v50 = vsub.f32 %v774_v42, %v782_v47 }
 0x7c6   :  { %v783_v51 = vsub.f32 %v773_v43, %v781_v49 }
 0x7c7   :  { %v786_v52 = vmul.f32 %v784_v50, %v784_v50 }
 0x7c8   :  { %v785_v53 = vmul.f32 %v783_v51, %v783_v51 }
 0x7c9   :  { %v790_v54 = vsel %vm158_vm0, %v786_v52, 0.0 }
 0x7ca   :  { %791 = vadd.xlane.f32.xlu1 %v790_v54  ;;  %v787_v55 = vsel %vm158_vm0, %v785_v53, 0.0  ;;  %v829_v54 = vld [vmem:[%s1995_s13] sm:$0xff] }
 0x7cb   :  { %788 = vadd.xlane.f32.xlu0 %v787_v55  ;;  %v830_v55 = vld [vmem:[%s1995_s13 + $0x8] sm:$0xff] }
 0x7cc   :  { %v2438_v56 = vpack.c.bf16 %v830_v55, %v829_v54 }
 0x857   :  { %v792_v62 = vpop.xlane.xlu1 %791 }
 0x858   :  { %v794_v63 = vmul.f32 0.03125, %v792_v62  ;;  %v789_v0 = vpop.xlane.xlu0 %788  ;;  %v836_v62 = vld [vmem:[%s2725_s17 + $0x10] sm:$0xff] }
 0x859   :  { %v793_v1 = vmul.f32 0.03125, %v789_v0  ;;  %v837_v0 = vld [vmem:[%s2725_s17 + $0x18] sm:$0xff] }
 0x85a   :  { %v796_v2 = vadd.f32 1e-05, %v794_v63  ;;  %v2446_v63 = vpack.c.bf16 %v835_v61, %v834_v60  ;;  %v1490_v60 = vld [vmem:[%s1999_s7 + $0x10] sm:$0xff]  ;;  %v1491_v61 = vld [vmem:[%s1999_s7 + $0x18] sm:$0xff] }
 0x85b   :  { %v795_v3 = vadd.f32 1e-05, %v793_v1  ;;  %v2450_v1 = vpack.c.bf16 %v837_v0, %v836_v62  ;;  %v2466_v62 = vpack.c.bf16 %v1491_v61, %v1490_v60 }
 0x85c   :  { %2531 = vrsqrt.f32 %v796_v2  ;;  %v838_v2 = vld [vmem:[%s2725_s17 + $0x20] sm:$0xff] }
 0x85d   :  { %2533 = vrsqrt.f32 %v795_v3  ;;  %v839_v3 = vld [vmem:[%s2725_s17 + $0x28] sm:$0xff] }
 0x866   :  { %v2532_v4 = vpop.eup %2531 }
 0x867   :  { %v2534_v6 = vpop.eup %2533  ;;  %v800_v7 = vmul.f32 %v2532_v4, %v784_v50  ;;  %v2454_v4 = vpack.c.bf16 %v839_v3, %v838_v2 }
 0x868   :  { %v799_v10 = vmul.f32 %v2534_v6, %v783_v51 }
 0x869   :  { %v808_v12 = vmul.f32 %v2020_v5, %v800_v7 }
 0x86a   :  { %v807_v13 = vmul.f32 %v2020_v5, %v799_v10 }
 0x86b   :  { %v816_v17 = vadd.f32 %v2021_v11, %v808_v12 }
 0x86c   :  { %v815_v14 = vadd.f32 %v2021_v11, %v807_v13 }
 0x86e   :  { %2241 = vmatprep.mubr.msk.f32.mxu1 %vm158_vm0, %v815_v14 }
 0x86f   :  { %2242 = vmatmul.mubr.msk.f32.vlgmr.msra.gmra.mrb[6].mxu1 %vm158_vm0, %v816_v17 }
 0x870   :  { %2248 = vmatprep.mubr.msk.f32.mxu1 %vm2545_vm1, %v2546_v9 }
 0x942   :  { %v2243_v18 = vpop.f32.mrb[6].mxu1 }
 0x943   :  { %v915_v20 = vpop.f32.mrb[7].mxu1 }
 0x944   :  { %v2422_v21 = vpack.c.bf16 %v2243_v18, %v915_v20 }
 0x946   :  { %2423 = vmatpush3.bf16.msra.mxu1 %v2422_v21  ;;  %v2031_v21 = vld [vmem:[%s1992_s25] ss:$0 sm:$0xff] }
 0x947   :  { %2424 = vmatprep.subr.bf16.mxu1 %v2544_v8 }
 0x949   :  { %2249 = vmatmul.mubr.msk.f32.vlgmr.msra.gmra.mrb[8].mxu1 %vm240_vm2, %v2603_v15 }
 0x94a   :  { %2426 = vmatpush3.bf16.msra.mxu1 %v2605_v16  ;;  %2259 = vmatprep.mubr.msk.f32.mxu1 %vm2545_vm1, %v2546_v9 }
 0x94b   :  { %2427 = vmatprep.subr.bf16.mxu1 %v2544_v8 }
 0x94e   :  { %2429 = vmatpush3.bf16.msra.mxu1 %v2611_v19 }
 0x94f   :  { %2439 = vmatprep.subr.bf16.mxu1 %v2438_v56 }
 0xa1c   :  { %v990_v24 = vpop.f32.mrb[8].mxu1 }
 0xa1d   :  { %v2250_v25 = vpop.f32.mrb[9].mxu1  ;;  %2260 = vmatmul.mubr.msk.f32.vlgmr.msra.gmra.mrb[10].mxu1 %vm158_vm0, %v990_v24 }
 0xa1e   :  { %2441 = vmatpush3.bf16.msra.mxu1 %v2438_v56 }
 0xa1f   :  { %2443 = vmatprep.subr.bf16.mxu1 %v2442_v59 }
 0xa22   :  { %2445 = vmatpush3.bf16.msra.mxu1 %v2442_v59  ;;  %v2462_v59 = vpack.c.bf16 %v1489_v58, %v1488_v57 }
 0xa24   :  { %2463 = vmatprep.subr.bf16.mxu1 %v2462_v59 }
 0xaf0   :  { %v1063_v28 = vpop.f32.mrb[10].mxu1 }
 0xaf1   :  { %v1067_v31 = vmul.f32 %v1063_v28, %v2631_v23  ;;  %v2261_v33 = vpop.f32.mrb[11].mxu1  ;;  %v840_v28 = vld [vmem:[%s2725_s17 + $0x30] sm:$0xff] }
 0xaf2   :  { %v2458_v30 = vpack.c.bf16 %v841_v29, %v840_v28  ;;  %v1495_v29 = vld [vmem:[%s2000_s19 + $0x18] sm:$0xff] }
 0xaf3   :  { %2262 = vmatprep.subr.mxu0 %v1067_v31 }
 0xaf4   :  { %2263 = vmatpush3.msra.mxu0 %v1067_v31  ;;  %v2032_v31 = vld [vmem:[%s1996_s29] ss:$0 sm:$0xff] }
 0xaf5   :  { %2265 = vmatmul.mubr.msk.f32.vlgmr.msra.gmra.mrb[8].mxu0 %vm388_vm3, %v2634_v32  ;;  %2431 = vmatprep.subr.bf16.mxu0 %v2430_v34 }
 0xaf6   :  { %2433 = vmatpush3.bf16.msra.mxu0 %v2430_v34 }
 0xaf7   :  { %2435 = vmatprep.subr.bf16.mxu0 %v2434_v35 }
 0xafa   :  { %2437 = vmatpush3.bf16.msra.mxu0 %v2434_v35 }
 0xafb   :  { %2447 = vmatprep.subr.bf16.mxu0 %v2446_v63 }
 0xbc8   :  { %v2266_v36 = vpop.f32.mrb[8].mxu0 }
 0xbc9   :  { %v1134_v37 = vpop.f32.mrb[9].mxu0 }
 0xbca   :  { %2275 = vmatprep.mubr.msk.f32.mxu0 %vm158_vm0, %v1134_v37 }
 0xbcb   :  { %2276 = vmatmul.mubr.msk.f32.vlgmr.msra.gmra.mrb[10].mxu0 %vm158_vm0, %v2266_v36 }
 0xbcc   :  { %2449 = vmatpush3.bf16.msra.mxu0 %v2446_v63 }
 0xbcd   :  { %2451 = vmatprep.subr.bf16.mxu0 %v2450_v1 }
 0xbd0   :  { %2453 = vmatpush3.bf16.msra.mxu0 %v2450_v1 }
 0xbd1   :  { %2455 = vmatprep.subr.bf16.mxu0 %v2454_v4 }
 0xbd4   :  { %2457 = vmatpush3.bf16.msra.mxu0 %v2454_v4 }
 0xbd5   :  { %2459 = vmatprep.subr.bf16.mxu0 %v2458_v30 }
 0xbd8   :  { %2461 = vmatpush3.bf16.msra.mxu0 %v2458_v30 }
 0xc9e   :  { %v2277_v38 = vpop.f32.mrb[10].mxu0 }
 0xc9f   :  { %v1225_v39 = vadd.f32 %v2277_v38, %v816_v17  ;;  %v1215_v40 = vpop.f32.mrb[11].mxu0 }
 0xca0   :  { %v1224_v41 = vadd.f32 %v1215_v40, %v815_v14  ;;  %v2030_v14 = vld [vmem:[%s1991_s21] ss:$0 sm:$0xff] }
 0xca1   :  { %v1229_v42 = vsel %vm158_vm0, %v1225_v39, 0.0 }
 0xca2   :  { %1230 = vadd.xlane.f32.xlu1 %v1229_v42  ;;  %v1226_v43 = vsel %vm158_vm0, %v1224_v41, 0.0 }
 0xca3   :  { %1227 = vadd.xlane.f32.xlu0 %v1226_v43 }
 0xd2f   :  { %v1231_v44 = vpop.xlane.xlu1 %1230 }
 0xd30   :  { %v1233_v45 = vmul.f32 0.03125, %v1231_v44  ;;  %v1228_v46 = vpop.xlane.xlu0 %1227 }
 0xd31   :  { %v1232_v47 = vmul.f32 0.03125, %v1228_v46 }
 0xd32   :  { %v1235_v48 = vsub.f32 %v1225_v39, %v1233_v45  ;;  %v2035_v39 = vld [vmem:[%s1998_s3] ss:$0 sm:$0xff] }
 0xd33   :  { %v1234_v49 = vsub.f32 %v1224_v41, %v1232_v47 }
 0xd34   :  { %v1237_v50 = vmul.f32 %v1235_v48, %v1235_v48 }
 0xd35   :  { %v1236_v51 = vmul.f32 %v1234_v49, %v1234_v49 }
 0xd36   :  { %v1241_v52 = vsel %vm158_vm0, %v1237_v50, 0.0 }
 0xd37   :  { %1242 = vadd.xlane.f32.xlu1 %v1241_v52  ;;  %v1238_v53 = vsel %vm158_vm0, %v1236_v51, 0.0 }
 0xd38   :  { %1239 = vadd.xlane.f32.xlu0 %v1238_v53 }
 0xdc4   :  { %v1243_v5 = vpop.xlane.xlu1 %1242 }
 0xdc5   :  { %v1245_v6 = vmul.f32 0.03125, %v1243_v5  ;;  %v1240_v7 = vpop.xlane.xlu0 %1239 }
 0xdc6   :  { %v1244_v10 = vmul.f32 0.03125, %v1240_v7 }
 0xdc7   :  { %v1247_v11 = vadd.f32 1e-05, %v1245_v6  ;;  %v2038_v6 = vld [vmem:[%s1993_s11] ss:$0 sm:$0xff] }
 0xdc8   :  { %v1246_v12 = vadd.f32 1e-05, %v1244_v10 }
 0xdc9   :  { %2535 = vrsqrt.f32 %v1247_v11 }
 0xdca   :  { %2537 = vrsqrt.f32 %v1246_v12  ;;  %v2039_v12 = vld [vmem:[%s1994_s15] ss:$0 sm:$0xff] }
 0xdd3   :  { %v2536_v13 = vpop.eup %2535 }
 0xdd4   :  { %v2538_v17 = vpop.eup %2537  ;;  %v1251_v18 = vmul.f32 %v2536_v13, %v1235_v48 }
 0xdd5   :  { %v1250_v20 = vmul.f32 %v2538_v17, %v1234_v49 }
 0xdd6   :  { %v1259_v24 = vmul.f32 %v2030_v14, %v1251_v18 }
 0xdd7   :  { %v1258_v25 = vmul.f32 %v2030_v14, %v1250_v20 }
 0xdd8   :  { %v1267_v27 = vadd.f32 %v2031_v21, %v1259_v24 }
 0xdd9   :  { %v1266_v26 = vadd.f32 %v2031_v21, %v1258_v25 }
 0xddb   :  { %2286 = vmatprep.mubr.msk.f32.mxu1 %vm158_vm0, %v1266_v26 }
 0xddc   :  { %2287 = vmatmul.mubr.msk.f32.vlgmr.msra.gmra.mrb[12].mxu1 %vm158_vm0, %v1267_v27 }
 0xddd   :  { %2465 = vmatpush3.bf16.msra.mxu1 %v2462_v59 }
 0xdde   :  { %2467 = vmatprep.subr.bf16.mxu1 %v2466_v62 }
 0xde1   :  { %2469 = vmatpush3.bf16.msra.mxu1 %v2466_v62 }
 0xde2   :  { %2470 = vmatprep.subr.bf16.mxu1 %v2544_v8 }
 0xeaf   :  { %v2288_v33 = vpop.f32.mrb[12].mxu1 }
 0xeb0   :  { %v1352_v34 = vadd.f32 %v2288_v33, %v2032_v31  ;;  %v1346_v35 = vpop.f32.mrb[13].mxu1  ;;  %v1878_v33 = vld [vmem:[%s2001_s23 + $0x8] sm:$0xff] }
 0xeb1   :  { %v1347_v36 = vadd.f32 %v2032_v31, %v1346_v35  ;;  %v1877_v31 = vld [vmem:[%s2001_s23] sm:$0xff]  ;;  %v1880_v35 = vld [vmem:[%s2001_s23 + $0x18] sm:$0xff] }
 0xeb2   :  { %v1356_v38 = vmax.f32 %v1352_v34, 0.0  ;;  %v2487_v34 = vpack.c.bf16 %v1878_v33, %v1877_v31 }
 0xeb3   :  { %v1355_v37 = vmax.f32 %v1347_v36, 0.0 }
 0xeb5   :  { %2305 = vmatprep.mubr.msk.f32.mxu0 %vm691_vm4, %v1355_v37 }
 0xeb6   :  { %2306 = vmatmul.mubr.msk.f32.vlgmr.msra.gmra.mrb[12].mxu0 %vm691_vm4, %v1356_v38 }
 0xeb7   :  { %2339 = vmatprep.mubr.msk.f32.mxu0 %vm388_vm3, %v2621_v22 }
 0xf89   :  { %v2307_v40 = vpop.f32.mrb[12].mxu0 }
 0xf8a   :  { %v1441_v41 = vadd.f32 %v2307_v40, %v2035_v39  ;;  %v1435_v42 = vpop.f32.mrb[13].mxu0  ;;  %v2048_v40 = vld [vmem:[%s2002_s27] ss:$0 sm:$0xff] }
 0xf8b   :  { %v1436_v43 = vadd.f32 %v2035_v39, %v1435_v42 }
 0xf8c   :  { %v1445_v44 = vadd.f32 %v1441_v41, %v1267_v27  ;;  %v1492_v27 = vld [vmem:[%s2000_s19] sm:$0xff] }
 0xf8d   :  { %v1444_v45 = vadd.f32 %v1436_v43, %v1266_v26 }
 0xf8e   :  { %v1449_v46 = vsel %vm158_vm0, %v1445_v44, 0.0 }
 0xf8f   :  { %1450 = vadd.xlane.f32.xlu1 %v1449_v46  ;;  %v1446_v47 = vsel %vm158_vm0, %v1444_v45, 0.0 }
 0xf90   :  { %1447 = vadd.xlane.f32.xlu0 %v1446_v47 }
0x101c   :  { %v1451_v48 = vpop.xlane.xlu1 %1450 }
0x101d   :  { %v1453_v22 = vmul.f32 0.03125, %v1451_v48  ;;  %v1448_v49 = vpop.xlane.xlu0 %1447 }
0x101e   :  { %v1452_v50 = vmul.f32 0.03125, %v1448_v49 }
0x101f   :  { %v1455_v51 = vsub.f32 %v1445_v44, %v1453_v22 }
0x1020   :  { %v1454_v52 = vsub.f32 %v1444_v45, %v1452_v50 }
0x1021   :  { %v1457_v53 = vmul.f32 %v1455_v51, %v1455_v51 }
0x1022   :  { %v1456_v54 = vmul.f32 %v1454_v52, %v1454_v52 }
0x1023   :  { %v1461_v55 = vsel %vm158_vm0, %v1457_v53, 0.0 }
0x1024   :  { %1462 = vadd.xlane.f32.xlu1 %v1461_v55  ;;  %v1458_v56 = vsel %vm158_vm0, %v1456_v54, 0.0 }
0x1025   :  { %1459 = vadd.xlane.f32.xlu0 %v1458_v56 }
0x10b1   :  { %v1463_v63 = vpop.xlane.xlu1 %1462 }
0x10b2   :  { %v1465_v0 = vmul.f32 0.03125, %v1463_v63  ;;  %v1460_v1 = vpop.xlane.xlu0 %1459 }
0x10b3   :  { %v1464_v2 = vmul.f32 0.03125, %v1460_v1 }
0x10b4   :  { %v1467_v3 = vadd.f32 1e-05, %v1465_v0 }
0x10b5   :  { %v1466_v4 = vadd.f32 1e-05, %v1464_v2 }
0x10b6   :  { %2539 = vrsqrt.f32 %v1467_v3 }
0x10b7   :  { %2541 = vrsqrt.f32 %v1466_v4 }
0x10c0   :  { %v2540_v5 = vpop.eup %2539 }
0x10c1   :  { %v2542_v7 = vpop.eup %2541  ;;  %v1471_v10 = vmul.f32 %v2540_v5, %v1455_v51 }
0x10c2   :  { %v1470_v11 = vmul.f32 %v2542_v7, %v1454_v52 }
0x10c3   :  { %v1479_v13 = vmul.f32 %v2038_v6, %v1471_v10 }
0x10c4   :  { %v1478_v14 = vmul.f32 %v2038_v6, %v1470_v11 }
0x10c5   :  { %v1487_v18 = vadd.f32 %v2039_v12, %v1479_v13 }
0x10c6   :  { %v1486_v17 = vadd.f32 %v2039_v12, %v1478_v14 }
0x10c8   :  { %2316 = vmatprep.mubr.msk.f32.mxu1 %vm158_vm0, %v1486_v17 }
0x10c9   :  { %2317 = vmatmul.mubr.msk.f32.vlgmr.msra.gmra.mrb[14].mxu1 %vm158_vm0, %v1487_v18 }
0x10ca   :  { %2323 = vmatprep.mubr.msk.f32.mxu1 %vm2545_vm1, %v2546_v9 }
0x119c   :  { %v2318_v20 = vpop.f32.mrb[14].mxu1 }
0x119d   :  { %v1568_v21 = vpop.f32.mrb[15].mxu1 }
0x119e   :  { %v2471_v24 = vpack.c.bf16 %v2318_v20, %v1568_v21 }
0x11a0   :  { %2472 = vmatpush3.bf16.msra.mxu1 %v2471_v24 }
0x11a1   :  { %2473 = vmatprep.subr.bf16.mxu1 %v2544_v8 }
0x11a3   :  { %2324 = vmatmul.mubr.msk.f32.vlgmr.msra.gmra.mrb[16].mxu1 %vm240_vm2, %v2603_v15  ;;  %v1493_v15 = vld [vmem:[%s2000_s19 + $0x8] sm:$0xff] }
0x11a4   :  { %2475 = vmatpush3.bf16.msra.mxu1 %v2605_v16  ;;  %2334 = vmatprep.mubr.msk.f32.mxu1 %vm2545_vm1, %v2546_v9  ;;  %v1494_v16 = vld [vmem:[%s2000_s19 + $0x10] sm:$0xff] }
0x11a5   :  { %2476 = vmatprep.subr.bf16.mxu1 %v2544_v8  ;;  %v2479_v8 = vpack.c.bf16 %v1493_v15, %v1492_v27 }
0x11a8   :  { %2478 = vmatpush3.bf16.msra.mxu1 %v2611_v19  ;;  %v2483_v19 = vpack.c.bf16 %v1495_v29, %v1494_v16 }
0x11a9   :  { %2488 = vmatprep.subr.bf16.mxu1 %v2487_v34 }
0x1276   :  { %v1643_v25 = vpop.f32.mrb[16].mxu1 }
0x1277   :  { %v2325_v26 = vpop.f32.mrb[17].mxu1  ;;  %2335 = vmatmul.mubr.msk.f32.vlgmr.msra.gmra.mrb[18].mxu1 %vm158_vm0, %v1643_v25 }
0x1278   :  { %2490 = vmatpush3.bf16.msra.mxu1 %v2487_v34 }
0x134a   :  { %v1716_v28 = vpop.f32.mrb[18].mxu1 }
0x134b   :  { %v1720_v9 = vmul.f32 %v1716_v28, %v2631_v23  ;;  %v2336_v30 = vpop.f32.mrb[19].mxu1  ;;  %v1879_v23 = vld [vmem:[%s2001_s23 + $0x10] sm:$0xff] }
0x134c   :  { %v2491_v36 = vpack.c.bf16 %v1880_v35, %v1879_v23 }
0x134d   :  { %2337 = vmatprep.subr.mxu0 %v1720_v9 }
0x134e   :  { %2338 = vmatpush3.msra.mxu0 %v1720_v9  ;;  %2492 = vmatprep.subr.bf16.mxu1 %v2491_v36 }
0x134f   :  { %2340 = vmatmul.mubr.msk.f32.vlgmr.msra.gmra.mrb[14].mxu0 %vm388_vm3, %v2634_v32  ;;  %2480 = vmatprep.subr.bf16.mxu0 %v2479_v8 }
0x1350   :  { %2482 = vmatpush3.bf16.msra.mxu0 %v2479_v8  ;;  %2494 = vmatpush3.bf16.msra.mxu1 %v2491_v36 }
0x1351   :  { %2484 = vmatprep.subr.bf16.mxu0 %v2483_v19 }
0x1354   :  { %2486 = vmatpush3.bf16.msra.mxu0 %v2483_v19 }
0x1422   :  { %v2341_v32 = vpop.f32.mrb[14].mxu0 }
0x1423   :  { %v1787_v37 = vpop.f32.mrb[15].mxu0 }
0x1424   :  { %2350 = vmatprep.mubr.msk.f32.mxu0 %vm158_vm0, %v1787_v37 }
0x1425   :  { %2351 = vmatmul.mubr.msk.f32.vlgmr.msra.gmra.mrb[16].mxu0 %vm158_vm0, %v2341_v32 }
0x14f8   :  { %v2352_v38 = vpop.f32.mrb[16].mxu0 }
0x14f9   :  { %v1868_v39 = vpop.f32.mrb[17].mxu0 }
0x14fa   :  { %2361 = vmatprep.mubr.msk.f32.mxu1 %vm158_vm0, %v1868_v39 }
0x14fb   :  { %2362 = vmatmul.mubr.msk.f32.vlgmr.msra.gmra.mrb[20].mxu1 %vm158_vm0, %v2352_v38 }
0x15ce   :  { %v2363_v41 = vpop.f32.mrb[20].mxu1 }
0x15cf   :  { %v1966_v42 = vadd.f32 %v2363_v41, %v2048_v40  ;;  %v1960_v43 = vpop.f32.mrb[21].mxu1 }
0x15d0   :  { %v1961_v44 = vadd.f32 %v2048_v40, %v1960_v43 }
0x15d1   :  { %1970 = vst [vmem:[%s2003_s1 + $0x8] sm:$0xff] %v1966_v42 }
0x15d2   :  { %1969 = vst [vmem:[%s2003_s1] sm:$0xff] %v1961_v44 }

</bundles_post_ra>
